<compile_context>
chip_gen: v7x
topology: tpu7x:2x2x1
jax: 0.10.0
libtpu: 0.0.40
codegen_flags: <defaults>
</compile_context>

<pallas_src>
import math
import numpy as np
import jax
import jax.numpy as jnp
from jax.experimental import pallas as pl
from jax.experimental.pallas import tpu as pltpu

# ----- hyper-parameters (small, consistent with the module) -----
IN_CHANNEL = 16                    # L == in_channel (time / lookback axis)
NUM_NODE = 4                       # N
HID = 32                           # hid_dim of Attention_MLP
TK = 8                             # topk
PADDING = 1                        # padding (integer multiplier in the module)

F_MAIN = IN_CHANNEL // 2 + 1                   # 9   rfft bins of length L
LP = (PADDING + 1) * IN_CHANNEL                # 32  zero-padded length
F_PAD = LP // 2 + 1                            # 17  rfft bins of padded signal
G_IN = F_PAD + F_MAIN                          # 26  gate input features

EPS_FFT = 1e-6
BIG = 3.0e38
LANE_TILE = 128


def fourier_block_kernel(x_ref, dftf_ref, idft_ref, w1_ref, b1_ref,
                         w2_ref, b2_ref, out_ref):
    x = x_ref[...]                                     # (L, C) lane-packed slab
    dot = lambda a, b: jnp.dot(a, b, preferred_element_type=jnp.float32)

    # ---- rfft(x) and rfft([x; zeros]) via ONE fused DFT matmul ----
    spec = dot(dftf_ref[...], x)                       # (2*F_MAIN + 2*F_PAD, C)
    reF = spec[0:F_MAIN]                               # (F_MAIN, C)
    imF = spec[F_MAIN:2 * F_MAIN]                      # (F_MAIN, C)
    reP = spec[2 * F_MAIN:2 * F_MAIN + F_PAD]          # (F_PAD, C)
    imP = spec[2 * F_MAIN + F_PAD:]                    # (F_PAD, C)

    # amplitudes exactly as in the module: sqrt((re+eps)^2 + (im+eps)^2)
    amp2 = (reF + EPS_FFT) ** 2 + (imF + EPS_FFT) ** 2         # squared amp
    amp = jnp.sqrt(amp2)                                       # (F_MAIN, C)
    amp_p = jnp.sqrt((reP + EPS_FFT) ** 2 + (imP + EPS_FFT) ** 2)

    # ---- top-k (keep TK of F_MAIN bins per column) ----
    # threshold = (F_MAIN - TK + 1)-th smallest, computed on squared amps so
    # the sqrt stays off the serial reduction chain.
    work = amp2
    for _ in range(F_MAIN - TK):
        mn = jnp.min(work, axis=0, keepdims=True)
        work = jnp.where(work <= mn, BIG, work)
    thr2 = jnp.min(work, axis=0, keepdims=True)
    amp_topk = jnp.where(amp2 >= thr2, amp, 0.0)               # (F_MAIN, C)

    # ---- Attention_MLP gate: weights in (out, in) layout, no transposes ----
    x_gate = jnp.concatenate([amp_topk, amp_p], axis=0)        # (G_IN, C)
    h = jnp.maximum(dot(w1_ref[...], x_gate) + b1_ref[...], 0.0)   # (HID, C)
    gate = jax.nn.sigmoid(dot(w2_ref[...], h) + b2_ref[...])       # (F_MAIN, C)

    # out_fft = x_fft * gate (real gate), then irfft via ONE fused matmul
    fspec = jnp.concatenate([reF * gate, imF * gate], axis=0)      # (2*F_MAIN, C)
    out_ref[...] = dot(idft_ref[...], fspec)                       # (L, C)


def fourier_block_forward(x, params, lane_tile=LANE_TILE):
    B, L, N = x.shape
    assert L == IN_CHANNEL and N == NUM_NODE
    # lane-pack: (B, L, N) -> (L, B*N); pad lanes up to a multiple of lane_tile
    xt = jnp.transpose(x, (1, 0, 2)).reshape(L, B * N)
    C = B * N
    c_pad = ((C + lane_tile - 1) // lane_tile) * lane_tile
    if c_pad != C:
        xt = jnp.pad(xt, ((0, 0), (0, c_pad - C)))

    in_specs = [pl.BlockSpec((L, lane_tile), lambda j: (0, j))]
    # all parameter slabs are 2-D and fully resident (constant index_map)
    in_specs += [pl.BlockSpec(p.shape, lambda j: (0, 0)) for p in params]

    out = pl.pallas_call(
        fourier_block_kernel,
        out_shape=jax.ShapeDtypeStruct((L, c_pad), jnp.float32),
        grid_spec=pltpu.PrefetchScalarGridSpec(
            num_scalar_prefetch=0,
            grid=(c_pad // lane_tile,),
            in_specs=in_specs,
            out_specs=pl.BlockSpec((L, lane_tile), lambda j: (0, j)),
        ),
        compiler_params=pltpu.CompilerParams(
            dimension_semantics=("parallel",)),
    )(xt, *params)

    # back to (B, L, N)
    return out[:, :C].reshape(L, B, N).transpose(1, 0, 2)


def make_params(key):
    L = IN_CHANNEL
    t = np.arange(L)
    kf = np.arange(F_MAIN)
    kp = np.arange(F_PAD)

    # forward DFT: rfft real = cos @ x, imag = -sin @ x; the padded signal is
    # [x; zeros] so only the first L time columns of its DFT matrix matter.
    cosL = np.cos(2.0 * np.pi * np.outer(kf, t) / L)            # (F_MAIN, L)
    sinL = np.sin(2.0 * np.pi * np.outer(kf, t) / L)
    cosP = np.cos(2.0 * np.pi * np.outer(kp, t) / LP)           # (F_PAD, L)
    sinP = np.sin(2.0 * np.pi * np.outer(kp, t) / LP)
    dft_fwd = np.concatenate([cosL, -sinL, cosP, -sinP], axis=0)   # (52, L)

    # irfft (n = L) as [icos | isin] applied to stacked [re; im]
    c = np.full(F_MAIN, 2.0)
    c[0] = 1.0
    c[-1] = 1.0
    ang = 2.0 * np.pi * np.outer(t, kf) / L
    icos = (c[None, :] / L) * np.cos(ang)                       # (L, F_MAIN)
    isin = -(c[None, :] / L) * np.sin(ang)
    idft = np.concatenate([icos, isin], axis=1)                 # (L, 2*F_MAIN)

    # learned parameters, PyTorch nn.Linear (out, in) layout and init
    ks = jax.random.split(key, 4)

    def lin_w(k, fan_in, shape):
        bound = 1.0 / math.sqrt(fan_in)
        return jax.random.uniform(k, shape, jnp.float32, -bound, bound)

    w1 = lin_w(ks[0], G_IN, (HID, G_IN))
    b1 = lin_w(ks[1], G_IN, (HID, 1))
    w2 = lin_w(ks[2], HID, (F_MAIN, HID))
    b2 = lin_w(ks[3], HID, (F_MAIN, 1))

    f32 = lambda a: jnp.asarray(a, jnp.float32)
    return (f32(dft_fwd), f32(idft), w1, b1, w2, b2)


if __name__ == "__main__":
    key = jax.random.PRNGKey(0)
    kx, kparam = jax.random.split(key)
    B = 2
    x = jax.random.normal(kx, (B, IN_CHANNEL, NUM_NODE), jnp.float32)
    params = make_params(kparam)

    out = fourier_block_forward(x, params)
    out = jax.block_until_ready(out)

    assert out.shape == (B, IN_CHANNEL, NUM_NODE), out.shape
    assert bool(jnp.all(jnp.isfinite(out)))
    print("KERNEL_OK")
</pallas_src>

<mosaic_0001>
module attributes {stable_mosaic.version = 11 : i64} {
  func.func @fourier_block_kernel(%arg0: i32, %arg1: memref<16x128xf32, #tpu.memory_space<vmem>>, %arg2: memref<52x16xf32, #tpu.memory_space<vmem>>, %arg3: memref<16x18xf32, #tpu.memory_space<vmem>>, %arg4: memref<32x26xf32, #tpu.memory_space<vmem>>, %arg5: memref<32x1xf32, #tpu.memory_space<vmem>>, %arg6: memref<9x32xf32, #tpu.memory_space<vmem>>, %arg7: memref<9x1xf32, #tpu.memory_space<vmem>>, %arg8: memref<16x128xf32, #tpu.memory_space<vmem>>) attributes {dimension_semantics = [#tpu.dimension_semantics<parallel>], iteration_bounds = array<i64: 1>, scalar_prefetch = 0 : i64, scratch_operands = 0 : i64, tpu.core_type = #tpu.core_type<tc>, window_params = [{transform_indices = @transform_0, window_bounds = array<i64: 16, 128>}, {pipeline_mode = #tpu.pipeline_mode<synchronous>, transform_indices = @transform_1, window_bounds = array<i64: 52, 16>}, {pipeline_mode = #tpu.pipeline_mode<synchronous>, transform_indices = @transform_2, window_bounds = array<i64: 16, 18>}, {pipeline_mode = #tpu.pipeline_mode<synchronous>, transform_indices = @transform_3, window_bounds = array<i64: 32, 26>}, {pipeline_mode = #tpu.pipeline_mode<synchronous>, transform_indices = @transform_4, window_bounds = array<i64: 32, 1>}, {pipeline_mode = #tpu.pipeline_mode<synchronous>, transform_indices = @transform_5, window_bounds = array<i64: 9, 32>}, {pipeline_mode = #tpu.pipeline_mode<synchronous>, transform_indices = @transform_6, window_bounds = array<i64: 9, 1>}, {transform_indices = @transform_7, window_bounds = array<i64: 16, 128>}]} {
    %c0 = arith.constant 0 : index
    %c0_0 = arith.constant 0 : index
    %0 = vector.load %arg1[%c0, %c0_0] : memref<16x128xf32, #tpu.memory_space<vmem>>, vector<16x128xf32>
    %c0_1 = arith.constant 0 : index
    %c0_2 = arith.constant 0 : index
    %1 = vector.load %arg2[%c0_1, %c0_2] : memref<52x16xf32, #tpu.memory_space<vmem>>, vector<52x16xf32>
    %cst = arith.constant dense<0.000000e+00> : vector<52x128xf32>
    %2 = tpu.matmul %1, %0, %cst {dimension_numbers = #tpu.dot_dimension_numbers<[1], [0], [0], [1], [0, 0, 1, 1], [], []>} : vector<52x16xf32>, vector<16x128xf32>, vector<52x128xf32> -> vector<52x128xf32>
    %3 = vector.extract_strided_slice %2 {offsets = [0, 0], sizes = [9, 128], strides = [1, 1]} : vector<52x128xf32> to vector<9x128xf32>
    %4 = vector.extract_strided_slice %2 {offsets = [9, 0], sizes = [9, 128], strides = [1, 1]} : vector<52x128xf32> to vector<9x128xf32>
    %5 = vector.extract_strided_slice %2 {offsets = [18, 0], sizes = [17, 128], strides = [1, 1]} : vector<52x128xf32> to vector<17x128xf32>
    %6 = vector.extract_strided_slice %2 {offsets = [35, 0], sizes = [17, 128], strides = [1, 1]} : vector<52x128xf32> to vector<17x128xf32>
    %cst_3 = arith.constant 9.99999997E-7 : f32
    %7 = vector.broadcast %cst_3 : f32 to vector<9x128xf32>
    %8 = arith.addf %3, %7 : vector<9x128xf32>
    %9 = arith.mulf %8, %8 : vector<9x128xf32>
    %cst_4 = arith.constant 9.99999997E-7 : f32
    %10 = vector.broadcast %cst_4 : f32 to vector<9x128xf32>
    %11 = arith.addf %4, %10 : vector<9x128xf32>
    %12 = arith.mulf %11, %11 : vector<9x128xf32>
    %13 = arith.addf %9, %12 : vector<9x128xf32>
    %14 = math.sqrt %13 : vector<9x128xf32>
    %cst_5 = arith.constant 9.99999997E-7 : f32
    %15 = vector.broadcast %cst_5 : f32 to vector<17x128xf32>
    %16 = arith.addf %5, %15 : vector<17x128xf32>
    %17 = arith.mulf %16, %16 : vector<17x128xf32>
    %cst_6 = arith.constant 9.99999997E-7 : f32
    %18 = vector.broadcast %cst_6 : f32 to vector<17x128xf32>
    %19 = arith.addf %6, %18 : vector<17x128xf32>
    %20 = arith.mulf %19, %19 : vector<17x128xf32>
    %21 = arith.addf %17, %20 : vector<17x128xf32>
    %22 = math.sqrt %21 : vector<17x128xf32>
    %cst_7 = arith.constant dense<0x7F800000> : vector<128xf32>
    %23 = vector.multi_reduction <minimumf>, %13, %cst_7 [0] : vector<9x128xf32> to vector<128xf32>
    %24 = vector.shape_cast %23 : vector<128xf32> to vector<1x128xf32>
    %25 = vector.broadcast %24 : vector<1x128xf32> to vector<9x128xf32>
    %26 = arith.cmpf ole, %13, %25 : vector<9x128xf32>
    %cst_8 = arith.constant 3.000000e+38 : f32
    %27 = vector.broadcast %cst_8 : f32 to vector<9x128xf32>
    %28 = arith.select %26, %27, %13 : vector<9x128xi1>, vector<9x128xf32>
    %cst_9 = arith.constant dense<0x7F800000> : vector<128xf32>
    %29 = vector.multi_reduction <minimumf>, %28, %cst_9 [0] : vector<9x128xf32> to vector<128xf32>
    %30 = vector.shape_cast %29 : vector<128xf32> to vector<1x128xf32>
    %31 = vector.broadcast %30 : vector<1x128xf32> to vector<9x128xf32>
    %32 = arith.cmpf oge, %13, %31 : vector<9x128xf32>
    %cst_10 = arith.constant 0.000000e+00 : f32
    %33 = vector.broadcast %cst_10 : f32 to vector<9x128xf32>
    %34 = arith.select %32, %14, %33 : vector<9x128xi1>, vector<9x128xf32>
    %35 = tpu.concatenate %34, %22 in 0 : vector<9x128xf32>, vector<17x128xf32> -> vector<26x128xf32>
    %c0_11 = arith.constant 0 : index
    %c0_12 = arith.constant 0 : index
    %36 = vector.load %arg4[%c0_11, %c0_12] : memref<32x26xf32, #tpu.memory_space<vmem>>, vector<32x26xf32>
    %cst_13 = arith.constant dense<0.000000e+00> : vector<32x128xf32>
    %37 = tpu.matmul %36, %35, %cst_13 {dimension_numbers = #tpu.dot_dimension_numbers<[1], [0], [0], [1], [0, 0, 1, 1], [], []>} : vector<32x26xf32>, vector<26x128xf32>, vector<32x128xf32> -> vector<32x128xf32>
    %c0_14 = arith.constant 0 : index
    %c0_15 = arith.constant 0 : index
    %38 = vector.load %arg5[%c0_14, %c0_15] : memref<32x1xf32, #tpu.memory_space<vmem>>, vector<32x1xf32>
    %39 = vector.broadcast %38 : vector<32x1xf32> to vector<32x128xf32>
    %40 = arith.addf %37, %39 : vector<32x128xf32>
    %cst_16 = arith.constant 0.000000e+00 : f32
    %41 = vector.broadcast %cst_16 : f32 to vector<32x128xf32>
    %42 = arith.maximumf %40, %41 : vector<32x128xf32>
    %c0_17 = arith.constant 0 : index
    %c0_18 = arith.constant 0 : index
    %43 = vector.load %arg6[%c0_17, %c0_18] : memref<9x32xf32, #tpu.memory_space<vmem>>, vector<9x32xf32>
    %cst_19 = arith.constant dense<0.000000e+00> : vector<9x128xf32>
    %44 = tpu.matmul %43, %42, %cst_19 {dimension_numbers = #tpu.dot_dimension_numbers<[1], [0], [0], [1], [0, 0, 1, 1], [], []>} : vector<9x32xf32>, vector<32x128xf32>, vector<9x128xf32> -> vector<9x128xf32>
    %c0_20 = arith.constant 0 : index
    %c0_21 = arith.constant 0 : index
    %45 = vector.load %arg7[%c0_20, %c0_21] : memref<9x1xf32, #tpu.memory_space<vmem>>, vector<9x1xf32>
    %46 = vector.broadcast %45 : vector<9x1xf32> to vector<9x128xf32>
    %47 = arith.addf %44, %46 : vector<9x128xf32>
    %48 = arith.negf %47 : vector<9x128xf32>
    %49 = math.exp %48 : vector<9x128xf32>
    %cst_22 = arith.constant 1.000000e+00 : f32
    %50 = vector.broadcast %cst_22 : f32 to vector<9x128xf32>
    %51 = arith.addf %50, %49 : vector<9x128xf32>
    %52 = arith.divf %50, %51 : vector<9x128xf32>
    %53 = arith.mulf %3, %52 : vector<9x128xf32>
    %54 = arith.mulf %4, %52 : vector<9x128xf32>
    %55 = tpu.concatenate %53, %54 in 0 : vector<9x128xf32>, vector<9x128xf32> -> vector<18x128xf32>
    %c0_23 = arith.constant 0 : index
    %c0_24 = arith.constant 0 : index
    %56 = vector.load %arg3[%c0_23, %c0_24] : memref<16x18xf32, #tpu.memory_space<vmem>>, vector<16x18xf32>
    %cst_25 = arith.constant dense<0.000000e+00> : vector<16x128xf32>
    %57 = tpu.matmul %56, %55, %cst_25 {dimension_numbers = #tpu.dot_dimension_numbers<[1], [0], [0], [1], [0, 0, 1, 1], [], []>} : vector<16x18xf32>, vector<18x128xf32>, vector<16x128xf32> -> vector<16x128xf32>
    %c0_26 = arith.constant 0 : index
    %c0_27 = arith.constant 0 : index
    %58 = vector.load %arg8[%c0_26, %c0_27] : memref<16x128xf32, #tpu.memory_space<vmem>>, vector<16x128xf32>
    tpu.vector_store %arg8[%c0_26, %c0_27], %57 {strides = array<i32>} : memref<16x128xf32, #tpu.memory_space<vmem>>, vector<16x128xf32>,
    return
  }
  func.func @transform_0(%arg0: i32) -> (i32, i32) {
    %c0_i32 = arith.constant 0 : i32
    %c0_i32_0 = arith.constant 0 : i32
    return %c0_i32, %arg0 : i32, i32
  }
  func.func @transform_1(%arg0: i32) -> (i32, i32) {
    %c0_i32 = arith.constant 0 : i32
    %c0_i32_0 = arith.constant 0 : i32
    %c0_i32_1 = arith.constant 0 : i32
    return %c0_i32, %c0_i32_0 : i32, i32
  }
  func.func @transform_2(%arg0: i32) -> (i32, i32) {
    %c0_i32 = arith.constant 0 : i32
    %c0_i32_0 = arith.constant 0 : i32
    %c0_i32_1 = arith.constant 0 : i32
    return %c0_i32, %c0_i32_0 : i32, i32
  }
  func.func @transform_3(%arg0: i32) -> (i32, i32) {
    %c0_i32 = arith.constant 0 : i32
    %c0_i32_0 = arith.constant 0 : i32
    %c0_i32_1 = arith.constant 0 : i32
    return %c0_i32, %c0_i32_0 : i32, i32
  }
  func.func @transform_4(%arg0: i32) -> (i32, i32) {
    %c0_i32 = arith.constant 0 : i32
    %c0_i32_0 = arith.constant 0 : i32
    %c0_i32_1 = arith.constant 0 : i32
    return %c0_i32, %c0_i32_0 : i32, i32
  }
  func.func @transform_5(%arg0: i32) -> (i32, i32) {
    %c0_i32 = arith.constant 0 : i32
    %c0_i32_0 = arith.constant 0 : i32
    %c0_i32_1 = arith.constant 0 : i32
    return %c0_i32, %c0_i32_0 : i32, i32
  }
  func.func @transform_6(%arg0: i32) -> (i32, i32) {
    %c0_i32 = arith.constant 0 : i32
    %c0_i32_0 = arith.constant 0 : i32
    %c0_i32_1 = arith.constant 0 : i32
    return %c0_i32, %c0_i32_0 : i32, i32
  }
  func.func @transform_7(%arg0: i32) -> (i32, i32) {
    %c0_i32 = arith.constant 0 : i32
    %c0_i32_0 = arith.constant 0 : i32
    return %c0_i32, %arg0 : i32, i32
  }
}

</mosaic_0001>

<bundles_post_ra>
// kernel: tpu_custom_call.1
= control target key start
LH: loop header
LB: loop body
LE: loop exit
PB: predicated region body
PF: predicated region fallthrough
CT: control target
= control target key end

     0   :  { %v811_v2 = vmov 0.0|0.0   ;;  %vm812_vm0 = vmmov 0   ;;  %v813_v4 = vmov 0.0   ;;  %vm36_vm1 = vcmask 130048   ;;  %s1012_s0 = inlined_call_operand.vmem [shape: f32[16,128], index: 0, kind: input, shape index: {}]   ;;  %s1013_s1 = inlined_call_operand.vmem [shape: f32[52,16], index: 1, kind: input, shape index: {}]   ;;  %s1014_s2 = inlined_call_operand.vmem [shape: f32[16,18], index: 2, kind: input, shape index: {}]   ;;  %s1015_s3 = inlined_call_operand.vmem [shape: f32[32,26], index: 3, kind: input, shape index: {}]   ;;  %s1016_s4 = inlined_call_operand.vmem [shape: f32[32,1], index: 4, kind: input, shape index: {}]   ;;  %s1017_s5 = inlined_call_operand.vmem [shape: f32[9,32], index: 5, kind: input, shape index: {}]   ;;  %s1018_s6 = inlined_call_operand.vmem [shape: f32[9,1], index: 6, kind: input, shape index: {}]   ;;  %s1019_s7 = inlined_call_operand.hbm [shape: f32[16,128], index: 7, kind: output, shape index: {}]  }
   0x1   :  { %v27_v0 = vld [vmem:[%s1012_s0] sm:$0xff]  ;;  %v28_v1 = vld [vmem:[%s1012_s0 + $0x8] sm:$0xff]  ;;  %732 = vmatprep.subr.bf16.mxu0 %v811_v2  ;;  %677 = vmatprep.mubr.msk.f32.mxu0 %vm812_vm0, %v813_v4 }
   0x2   :  { %v733_v3 = vpack.c.bf16 %v28_v1, %v27_v0  ;;  %v29_v5 = vld [vmem:[%s1013_s1] sm:$0xff] }
   0x4   :  { %734 = vmatpush3.bf16.msra.mxu0 %v733_v3 }
   0x5   :  { %12 = vsyncpa [#allocation3], 0  ;;  %v30_v6 = vld [vmem:[%s1013_s1 + $0x8] sm:$0xff]  ;;  %v31_v7 = vld [vmem:[%s1013_s1 + $0x10] sm:$0xff]  ;;  %vm295_vm2 = vcmask 211968   ;;  %v814_v15 = vmov 0  }
   0x6   :  { %v32_v8 = vld [vmem:[%s1013_s1 + $0x18] sm:$0xff]  ;;  %v33_v9 = vld [vmem:[%s1013_s1 + $0x20] sm:$0xff]  ;;  %v34_v10 = vld [vmem:[%s1013_s1 + $0x28] sm:$0xff]  ;;  %767 = vset.pattern.permute.xlu0 %v814_v15  ;;  %768 = vset.pattern.permute.xlu1 %v814_v15  ;;  %vm166_vm3 = vcmask 1046528   ;;  %vm231_vm4 = vcmask 1040384   ;;  %s816_s17 = smov [#allocation2]  }
   0x7   :  { %678 = vmatmul.mubr.msk.f32.vlgmr.msra.gmra.mrb[0].mxu0 %vm36_vm1, %v29_v5  ;;  %v35_v11 = vld [vmem:[%s1013_s1 + $0x30] sm:$0xf]  ;;  %v267_v12 = vld [vmem:[%s1015_s3] sm:$0xff]  ;;  %v272_v16 = vld [vmem:[%s1016_s4 + $0x8] sm:$0xff]  ;;  %s614_s18 = sshll.u32 %s816_s17, 4  ;;  %s615_s18 = int_to_ptr.vmem [resolvable:$true] %s614_s18 }
   0x8   :  { %680 = vmatprep.mubr.msk.f32.mxu0 %vm812_vm0, %v813_v4  ;;  %706 = vmatprep.mubr.msk.f32.mxu1 %vm295_vm2, %v267_v12  ;;  %v271_v13 = vld [vmem:[%s1016_s4] sm:$0xff]  ;;  %v273_v14 = vld [vmem:[%s1016_s4 + $0x10] sm:$0xff]  ;;  %v274_v17 = vld [vmem:[%s1016_s4 + $0x18] sm:$0xff]  ;;  %s787_s19 = scalar_lea.vmem %s615_s18, 256  ;;  %p792_p1 = scmp.lt.s32.totalorder %s615_s18, %s615_s18 }
   0x9   :  { %277 = vperm.xlu0 %767, %v271_v13   ;;  %287 = vperm.xlu1 %768, %v273_v14   ;;  %v402_v18 = vld [vmem:[%s1018_s6] sm:$0xff]  ;;  %v403_v19 = vld [vmem:[%s1018_s6 + $0x8] sm:$0x1]  ;;  %p788_p0 = scmp.ne.s32.totalorder %s615_s18, %s787_s19  ;;  %p793_p2 = scmp.lt.s32.totalorder %s787_s19, %s787_s19 }
   0xb   :  { %681 = vmatmul.mubr.msk.f32.gmra.mrb[2].mxu0 %vm36_vm1, %v30_v6  ;;  %p794_p3 = por %p793_p2, %p792_p1 }
   0xc   :  { %683 = vmatprep.mubr.msk.f32.mxu0 %vm812_vm0, %v813_v4 }
   0xd   :  { %282 = vperm.xlu0 %767, %v272_v16   ;;  %292 = vperm.xlu1 %768, %v274_v17   ;;  %p795_p4 = pnand %p794_p3, %p788_p0 }
   0xf   :  { %684 = vmatmul.mubr.msk.f32.gmra.mrb[4].mxu0 %vm36_vm1, %v31_v7 }
  0x10   :  { %686 = vmatprep.mubr.msk.f32.mxu0 %vm812_vm0, %v813_v4 }
  0x11   :  { %406 = vperm.xlu0 %767, %v402_v18   ;;  %411 = vperm.xlu1 %768, %v403_v19  }
  0x13   :  { %687 = vmatmul.mubr.msk.f32.gmra.mrb[6].mxu0 %vm36_vm1, %v32_v8 }
  0x14   :  { %689 = vmatprep.mubr.msk.f32.mxu0 %vm812_vm0, %v813_v4 }
  0x17   :  { %690 = vmatmul.mubr.msk.f32.gmra.mrb[8].mxu0 %vm36_vm1, %v33_v9 }
  0x18   :  { %692 = vmatprep.mubr.msk.f32.mxu0 %vm812_vm0, %v813_v4 }
  0x1b   :  { %693 = vmatmul.mubr.msk.f32.gmra.mrb[10].mxu0 %vm36_vm1, %v34_v10 }
  0x1c   :  { %695 = vmatprep.mubr.msk.f32.mxu0 %vm812_vm0, %v813_v4  ;;  %vm308_vm0 = vcmask 1041408  }
  0x1f   :  { %696 = vmatmul.mubr.msk.f32.gmra.mrb[12].mxu0 %vm36_vm1, %v35_v11 }
  0xda   :  { %v922_v20 = vpop.f32.mrb[0].mxu0 }
  0xdb   :  { %v679_v21 = vpop.f32.mrb[1].mxu0  ;;  %v158_v29 = vadd.f32 1e-06, %v922_v20 }
  0xdd   :  { %v160_v35 = vmul.f32 %v158_v29, %v158_v29 }
  0xde   :  { %v924_v22 = vpop.f32.mrb[2].mxu0 }
  0xdf   :  { %v159_v23 = vadd.f32 1e-06, %v924_v22  ;;  %v682_v24 = vpop.f32.mrb[3].mxu0 }
  0xe1   :  { %v161_v26 = vmul.f32 %v159_v23, %v159_v23 }
  0xe2   :  { %v927_v25 = vpop.f32.mrb[4].mxu0 }
  0xe3   :  { %v162_v27 = vadd.f32 1e-06, %v927_v25  ;;  %v685_v28 = vpop.f32.mrb[5].mxu0  ;;  %v167_v32 = vrot.slane %v161_v26, 1 }
  0xe5   :  { %v163_v30 = vmul.f32 %v162_v27, %v162_v27 }
  0xe6   :  { %v139_v31 = vpop.f32.mrb[6].mxu0 }
  0xe7   :  { %v168_v33 = vrot.slane %v163_v30, 1  ;;  %v688_v34 = vpop.f32.mrb[7].mxu0  ;;  %v188_v56 = vadd.f32 1e-06, %v139_v31 }
  0xe9   :  { %v169_v36 = vsel %vm166_vm3, %v167_v32, %v168_v33  ;;  %v932_v37 = vadd.f32 %v168_v33, %v161_v26  ;;  %v190_v63 = vmul.f32 %v188_v56, %v188_v56  ;;  %v278_v56 = vpop.permute.xlu0 %277 }
  0xea   :  { %v934_v38 = vadd.f32 %v169_v36, %v160_v35  ;;  %v144_v39 = vpop.f32.mrb[8].mxu0 }
  0xeb   :  { %v189_v40 = vadd.f32 1e-06, %v144_v39  ;;  %v691_v41 = vpop.f32.mrb[9].mxu0  ;;  %v232_v42 = vsel %vm231_vm4, %v932_v37, inf  ;;  %vm183_vm13 = vcmp.eq.f32.partialorder %v932_v37, inf  ;;  %vm185_vm15 = vcmp.eq.f32.partialorder %v932_v37, 0.0 }
  0xec   :  { %v233_v44 = vmin.f32 %v934_v38, %v232_v42  ;;  %vm176_vm14 = vcmp.eq.f32.partialorder %v934_v38, inf }
  0xed   :  { %v191_v45 = vmul.f32 %v189_v40, %v189_v40 }
  0xee   :  { %v149_v43 = vpop.f32.mrb[10].mxu0  ;;  %v234_v48 = vrot.slane %v233_v44, 4 }
  0xef   :  { %v192_v46 = vadd.f32 1e-06, %v149_v43  ;;  %v694_v47 = vpop.f32.mrb[11].mxu0  ;;  %v199_v52 = vrot.slane %v191_v45, 1 }
  0xf0   :  { %v235_v51 = vmin.f32 %v233_v44, %v234_v48  ;;  %v186_v44 = vand.u32 2147483648, %v932_v37  ;;  %v179_v48 = vand.u32 2147483648, %v934_v38 }
  0xf1   :  { %v194_v49 = vmul.f32 %v192_v46, %v192_v46 }
  0xf2   :  { %v154_v50 = vpop.f32.mrb[12].mxu0  ;;  %v236_v57 = vrot.slane %v235_v51, 2 }
  0xf3   :  { %v200_v53 = vrot.slane %v194_v49, 1  ;;  %v193_v54 = vadd.f32 1e-06, %v154_v50  ;;  %v697_v55 = vpop.f32.mrb[13].mxu0 }
  0xf4   :  { %v237_v61 = vmin.f32 %v235_v51, %v236_v57  ;;  %v400_v55 = vld [vmem:[%s1017_s5] sm:$0xff]  ;;  %v288_v57 = vpop.permute.xlu1 %287 }
  0xf5   :  { %v201_v58 = vsel %vm166_vm3, %v199_v52, %v200_v53  ;;  %v195_v59 = vmul.f32 %v193_v54, %v193_v54  ;;  %v268_v54 = vld [vmem:[%s1015_s3 + $0x8] sm:$0xff] }
  0xf6   :  { %v207_v60 = vadd.f32 %v201_v58, %v163_v30  ;;  %v238_v3 = vrot.slane %v237_v61, 1  ;;  %v283_v58 = vpop.permute.xlu0 %282 }
  0xf7   :  { %v202_v62 = vrot.slane %v195_v59, 1 }
  0xf8   :  { %769 = vrsqrt.f32 %v207_v60  ;;  %v239_v4 = vmin.f32 %v237_v61, %v238_v3  ;;  %vm212_vm7 = vcmp.eq.f32.partialorder %v207_v60, inf  ;;  %vm214_vm8 = vcmp.eq.f32.partialorder %v207_v60, 0.0 }
  0xf9   :  { %v203_v0 = vsel %vm166_vm3, %v200_v53, %v202_v62  ;;  %v209_v1 = vadd.f32 %v202_v62, %v191_v45  ;;  %771 = vrsqrt.f32 %v932_v37  ;;  %v215_v16 = vand.u32 2147483648, %v207_v60 }
  0xfa   :  { %v208_v2 = vadd.f32 %v203_v0, %v190_v63  ;;  %vm240_vm5 = vcmp.le.f32.partialorder %v934_v38, %v239_v4  ;;  %vm241_vm6 = vcmp.le.f32.partialorder %v932_v37, %v239_v4  ;;  %v293_v0 = vpop.permute.xlu1 %292 }
  0xfb   :  { %773 = vrsqrt.f32 %v209_v1  ;;  %v242_v5 = vsel %vm240_vm5, 3e+38, %v934_v38  ;;  %v243_v6 = vsel %vm241_vm6, 3e+38, %v932_v37  ;;  %vm226_vm9 = vcmp.eq.f32.partialorder %v209_v1, inf }
  0xfc   :  { %775 = vrsqrt.f32 %v208_v2  ;;  %v244_v7 = vsel %vm231_vm4, %v243_v6, inf  ;;  %vm219_vm10 = vcmp.eq.f32.partialorder %v208_v2, inf  ;;  %vm228_vm11 = vcmp.eq.f32.partialorder %v209_v1, 0.0 }
  0xfd   :  { %777 = vrsqrt.f32 %v934_v38  ;;  %v245_v9 = vmin.f32 %v242_v5, %v244_v7  ;;  %v229_v21 = vand.u32 2147483648, %v209_v1  ;;  %v222_v26 = vand.u32 2147483648, %v208_v2 }
  0xfe   :  { %vm221_vm12 = vcmp.eq.f32.partialorder %v208_v2, 0.0  ;;  %vm815_vm6 = vmmov 1  }
  0xff   :  { %v246_v12 = vrot.slane %v245_v9, 4 }
 0x101   :  { %v247_v17 = vmin.f32 %v245_v9, %v246_v12  ;;  %v412_v12 = vpop.permute.xlu1 %411 }
 0x102   :  { %v770_v8 = vpop.eup %769 }
 0x103   :  { %v211_v10 = vmul.f32 %v770_v8, %v207_v60  ;;  %v772_v11 = vpop.eup %771  ;;  %v248_v27 = vrot.slane %v247_v17, 2 }
 0x104   :  { %v182_v29 = vmul.f32 %v772_v11, %v932_v37  ;;  %v520_v11 = vld [vmem:[%s1014_s2] sm:$0xff] }
 0x105   :  { %v774_v13 = vpop.eup %773  ;;  %v213_v14 = vsel %vm212_vm7, %v207_v60, %v211_v10  ;;  %v249_v33 = vmin.f32 %v247_v17, %v248_v27  ;;  %vm742_vm7 = vmpackc.low %vm308_vm0, %vm815_vm6  ;;  %v401_v10 = vld [vmem:[%s1017_s5 + $0x8] sm:$0x1] }
 0x106   :  { %v776_v15 = vpop.eup %775  ;;  %v225_v18 = vmul.f32 %v774_v13, %v209_v1  ;;  %v216_v24 = vsel %vm214_vm8, %v215_v16, %v213_v14  ;;  %v184_v41 = vsel %vm183_vm13, %v932_v37, %v182_v29  ;;  %v407_v14 = vpop.permute.xlu0 %406 }
 0x107   :  { %v218_v19 = vmul.f32 %v776_v15, %v208_v2  ;;  %v778_v23 = vpop.eup %777  ;;  %v259_v36 = vrot.slane %v216_v24, 1  ;;  %v250_v40 = vrot.slane %v249_v33, 1  ;;  %v187_v49 = vsel %vm185_vm15, %v186_v44, %v184_v41 }
 0x108   :  { %v227_v28 = vsel %vm226_vm9, %v209_v1, %v225_v18  ;;  %v175_v35 = vmul.f32 %v778_v23, %v934_v38  ;;  %vm414_vm9 = vcmask 261120  }
 0x109   :  { %v220_v30 = vsel %vm219_vm10, %v208_v2, %v218_v19  ;;  %v230_v31 = vsel %vm228_vm11, %v229_v21, %v227_v28  ;;  %v251_v45 = vmin.f32 %v249_v33, %v250_v40  ;;  %v521_v40 = vld [vmem:[%s1014_s2 + $0x8] sm:$0xff] }
 0x10a   :  { %v223_v32 = vsel %vm221_vm12, %v222_v26, %v220_v30  ;;  %v262_v34 = vrot.slane %v230_v31, 1  ;;  %v177_v47 = vsel %vm176_vm14, %v934_v38, %v175_v35 }
 0x10b   :  { %v260_v39 = vrot.slane %v223_v32, 1  ;;  %vm252_vm1 = vcmp.ge.f32.partialorder %v934_v38, %v251_v45  ;;  %vm253_vm5 = vcmp.ge.f32.partialorder %v932_v37, %v251_v45  ;;  %v269_v37 = vld [vmem:[%s1015_s3 + $0x10] sm:$0xff] }
 0x10c   :  { %v255_v50 = vsel %vm253_vm5, %v187_v49, 0.0  ;;  %vm736_vm8 = vmpackc.low %vm815_vm6, %vm252_vm1 }
 0x10d   :  { %v261_v42 = vsel %vm166_vm3, %v259_v36, %v260_v39  ;;  %v263_v43 = vsel %vm166_vm3, %v260_v39, %v262_v34  ;;  %vm178_vm3 = vcmp.eq.f32.partialorder %v934_v38, 0.0  ;;  %v270_v38 = vld [vmem:[%s1015_s3 + $0x18] sm:$0xff] }
 0x10e   :  { %v741_v46 = vpack.c.bf16 %v262_v34, %v263_v43  ;;  %v180_v51 = vsel %vm178_vm3, %v179_v48, %v177_v47  ;;  %v266_v52 = vsel %vm231_vm4, %v255_v50, %v261_v42 }
 0x10f   :  { %v735_v53 = vpack.c.bf16 %v266_v52, %v180_v51 }
 0x111   :  { %737 = vmatprep.subr.msk.bf16.mxu1 %vm736_vm8, %v735_v53 }
 0x112   :  { %740 = vmatpush3.bf16.msk.msra.mxu1 %vm736_vm8, %v735_v53 }
 0x113   :  { %743 = vmatprep.subr.msk.bf16.mxu1 %vm742_vm7, %v741_v46 }
 0x116   :  { %746 = vmatpush3.bf16.msk.msra.mxu1 %vm742_vm7, %v741_v46 }
 0x119   :  { %707 = vmatmul.mubr.msk.f32.vlgmr.msra.gmra.mrb[0].mxu1 %vm295_vm2, %v268_v54 }
 0x11a   :  { %709 = vmatprep.mubr.msk.f32.mxu1 %vm295_vm2, %v269_v37 }
 0x11d   :  { %710 = vmatmul.mubr.msk.f32.gmra.mrb[2].mxu1 %vm295_vm2, %v270_v38  ;;  %vm522_vm2 = vcmask 146432  }
 0x11e   :  { %720 = vmatprep.mubr.msk.f32.mxu1 %vm414_vm9, %v400_v55 }
 0x1ec   :  { %v708_v59 = vpop.f32.mrb[0].mxu1 }
 0x1ed   :  { %v383_v60 = vadd.f32 %v708_v59, %v283_v58  ;;  %v377_v61 = vpop.f32.mrb[1].mxu1 }
 0x1ee   :  { %v378_v62 = vadd.f32 %v377_v61, %v278_v56 }
 0x1ef   :  { %v397_v63 = vmax.f32 %v383_v60, 0.0 }
 0x1f0   :  { %v396_v1 = vmax.f32 %v378_v62, 0.0  ;;  %v711_v2 = vpop.f32.mrb[2].mxu1 }
 0x1f1   :  { %v393_v3 = vadd.f32 %v711_v2, %v293_v0  ;;  %v387_v4 = vpop.f32.mrb[3].mxu1 }
 0x1f2   :  { %v747_v5 = vpack.c.bf16 %v397_v63, %v396_v1  ;;  %v388_v6 = vadd.f32 %v387_v4, %v288_v57 }
 0x1f3   :  { %v399_v7 = vmax.f32 %v393_v3, 0.0 }
 0x1f4   :  { %v398_v8 = vmax.f32 %v388_v6, 0.0  ;;  %748 = vmatprep.subr.bf16.mxu1 %v747_v5 }
 0x1f5   :  { %750 = vmatpush3.bf16.msra.mxu1 %v747_v5 }
 0x1f6   :  { %v751_v9 = vpack.c.bf16 %v399_v7, %v398_v8 }
 0x1f8   :  { %752 = vmatprep.subr.bf16.mxu1 %v751_v9 }
 0x1f9   :  { %754 = vmatpush3.bf16.msra.mxu1 %v751_v9 }
 0x1fc   :  { %721 = vmatmul.mubr.msk.f32.vlgmr.msra.gmra.mrb[4].mxu1 %vm414_vm9, %v401_v10 }
 0x1fd   :  { %729 = vmatprep.mubr.msk.f32.mxu1 %vm522_vm2, %v520_v11 }
 0x2cf   :  { %v722_v13 = vpop.f32.mrb[4].mxu1 }
 0x2d0   :  { %v493_v15 = vadd.f32 %v722_v13, %v412_v12  ;;  %v487_v16 = vpop.f32.mrb[5].mxu1 }
 0x2d1   :  { %v488_v17 = vadd.f32 %v487_v16, %v407_v14 }
 0x2d2   :  { %v641_v18 = vmul.f32 -1.442695, %v493_v15 }
 0x2d3   :  { %v640_v19 = vmul.f32 -1.442695, %v488_v17 }
 0x2d4   :  { %779 = vpow2.f32 %v641_v18 }
 0x2d5   :  { %781 = vpow2.f32 %v640_v19 }
 0x2de   :  { %v780_v21 = vpop.eup %779 }
 0x2df   :  { %v782_v23 = vpop.eup %781  ;;  %v503_v24 = vadd.f32 1.0, %v780_v21 }
 0x2e0   :  { %v502_v26 = vadd.f32 1.0, %v782_v23 }
 0x2e1   :  { %783 = vrcp.f32 %v503_v24 }
 0x2e2   :  { %785 = vrcp.f32 %v502_v26 }
 0x2eb   :  { %v784_v27 = vpop.eup %783 }
 0x2ec   :  { %v786_v28 = vpop.eup %785  ;;  %v509_v29 = vmul.f32 %v784_v27, %v924_v22  ;;  %v513_v30 = vrot.slane %v784_v27, 7 }
 0x2ed   :  { %v508_v31 = vmul.f32 %v786_v28, %v922_v20  ;;  %v512_v32 = vrot.slane %v786_v28, 7 }
 0x2ef   :  { %v517_v33 = vmul.f32 %v512_v32, %v924_v22  ;;  %v514_v34 = vsel %vm231_vm4, %v512_v32, %v513_v30 }
 0x2f0   :  { %v518_v35 = vmul.f32 %v514_v34, %v927_v25 }
 0x2f1   :  { %v519_v36 = vsel %vm231_vm4, %v509_v29, %v517_v33 }
 0x2f2   :  { %v755_v39 = vpack.c.bf16 %v519_v36, %v508_v31 }
 0x2f4   :  { %756 = vmatprep.subr.bf16.mxu1 %v755_v39 }
 0x2f5   :  { %758 = vmatpush3.bf16.msra.mxu1 %v755_v39 }
 0x2f6   :  { %727 = vmatprep.subr.msk.mxu1 %vm308_vm0, %v518_v35 }
 0x2f9   :  { %728 = vmatpush3.msk.msra.mxu1 %vm308_vm0, %v518_v35 }
 0x2fa   :  { %730 = vmatmul.mubr.msk.f32.vlgmr.msra.gmra.mrb[6].mxu1 %vm522_vm2, %v521_v40 }
 0x3cd   :  { %v731_v20 = vpop.f32.mrb[6].mxu1 }
 0x3ce   :  { %608 = vst [vmem:[#allocation2 + $0x8] sm:$0xff] %v731_v20  ;;  %v598_v22 = vpop.f32.mrb[7].mxu1 }
 0x3cf   :  { %607 = vst [vmem:[#allocation2] sm:$0xff] %v598_v22 }
 0x3d0   :  { %798 = shalt.err (!%p795_p4)
}
 0x3d1   :  { %s799_s21 = scalar_lea.hbm %s1019_s7, 256 }
 0x3d2   :  { %p800_p5 = scmp.ne.s32.totalorder %s1019_s7, %s799_s21  ;;  %p803_p6 = scmp.lt.u32.totalorder %s799_s21, %s1019_s7 }
 0x3d4   :  { %p805_p7 = pnand %p803_p6, %p800_p5 }
 0x3d6   :  { %808 = shalt.err (!%p805_p7)
}
 0x3d7   :  { %s817_s25 = smov 128   ;;  %s818_s26 = smov 8  }
 0x3d8   :  { %620 = dma.vmem_to_hbm [thread:$0]  %s615_s18, 256, %s1019_s7, [#allocation3], %s817_s25, %s817_s25, %s818_s26  }
 0x3d9   :  { %809 = dma.done.wait [#allocation3], 256  }
 0x3da   :  { %810 = vsyncadd [#allocation3], 4294967040 }
 0x3db   :  { %624 = vsyncpa [#allocation3], 1 }

</bundles_post_ra>
